<compile_context>
chip_gen: v7x
topology: tpu7x:2x2x1
jax: 0.10.0
libtpu: 0.0.40
codegen_flags: <defaults>
</compile_context>

<pallas_src>
import functools
from typing import NamedTuple, Optional

import jax
import jax.numpy as jnp
from jax.experimental import pallas as pl
from jax.experimental.pallas import tpu as pltpu


def _round_up(x: int, m: int) -> int:
    return ((x + m - 1) // m) * m


def _vmem_limit_bytes() -> int:
    """Scoped-VMEM budget with headroom for compiler scratch / semaphores."""
    try:
        cap = int(pltpu.get_tpu_info().vmem_capacity_bytes)
    except Exception:
        cap = 64 * 1024 * 1024  # v7x-safe fallback
    # ~104 MiB on 128 MiB parts (v5e/v6e), ~54 MiB on 64 MiB parts (v7x).
    return min(int(cap * 0.85), 100 * 1024 * 1024)


# --------------------------------------------------------------------------- #
# Kernel
# --------------------------------------------------------------------------- #
def _ffn_kernel(x_ref, w12_ref, w3_ref, o_ref, acc_ref, *, th, mxu_dtype):
    """One (token-tile i, hidden-tile h) grid step.

    x_ref  : (tm, E)      token tile (constant across h)
    w12_ref: (E, 2*th)    packed [W1^T_h | W2^T_h] tile
    w3_ref : (th, E)      W3^T row tile
    o_ref  : (tm, E)      output tile (written on the last h step)
    acc_ref: (tm, E) f32  VMEM accumulator, persistent across the h axis
    """
    h = pl.program_id(1)

    @pl.when(h == 0)
    def _():
        acc_ref[...] = jnp.zeros_like(acc_ref)

    x = x_ref[...]
    if mxu_dtype is not None:
        x = x.astype(mxu_dtype)

    # Fused gate matmul: one MXU weight stream covers both fc1 and fc2.
    h12 = jnp.dot(x, w12_ref[...], preferred_element_type=jnp.float32)  # (tm, 2th)
    gated = jax.nn.silu(h12[:, :th]) * h12[:, th:]                      # f32 (VPU/EUP)

    # Down projection for this H tile, accumulated in f32.  Cast the LHS to
    # the MXU input dtype (bf16 when activations are bf16), not the weight
    # dtype, so a f32-stored weight can't silently force the slow f32 path.
    lhs_dtype = mxu_dtype if mxu_dtype is not None else x_ref.dtype
    acc_ref[...] += jnp.dot(gated.astype(lhs_dtype), w3_ref[...],
                            preferred_element_type=jnp.float32)

    @pl.when(h == pl.num_programs(1) - 1)
    def _():
        o_ref[...] = acc_ref[...].astype(o_ref.dtype)


# --------------------------------------------------------------------------- #
# Weight preparation (call once per model load)
# --------------------------------------------------------------------------- #
class PreparedFFN(NamedTuple):
    """Kernel-layout FFN weights. `th` is carried so pack/apply never diverge."""
    w12t: jax.Array   # (E, 2H): per H-tile h, cols [h*2th, h*2th+th) = W1^T tile h
                      #                         cols [h*2th+th, (h+1)*2th) = W2^T tile h
    w3t: jax.Array    # (H, E) = W3^T
    th: int           # H tile size the packing was built with


def _pick_th(E: int, H: int, itemsize: int, vmem_budget: int) -> int:
    # Fully-resident, single-buffered weights when they fit comfortably.
    if 3 * E * H * itemsize <= vmem_budget // 3:
        return H
    for cand in (256, 512, 128):   # prefer 256: MXU-aligned on v6e/v7x, ok on v5e
        if cand < H and H % cand == 0:
            return cand
    return H


def prepare_ffn_weights(w1, w2, w3, *, th: Optional[int] = None,
                        dtype=None) -> PreparedFFN:
    """Lay out PyTorch nn.Linear weights for the kernel. Call ONCE per load.

    w1, w2: (H, E)   (out_features, in_features);  w3: (E, H).
    Pass dtype=jnp.bfloat16 to store weights in bf16 (fast MXU path).
    """
    w1, w2, w3 = jnp.asarray(w1), jnp.asarray(w2), jnp.asarray(w3)
    if dtype is not None:
        w1, w2, w3 = w1.astype(dtype), w2.astype(dtype), w3.astype(dtype)
    H, E = w1.shape
    assert w2.shape == (H, E) and w3.shape == (E, H), "weight shape mismatch"

    if th is None:
        th = _pick_th(E, H, w1.dtype.itemsize, _vmem_limit_bytes())
    th = min(th, H)
    assert H % th == 0, "hidden_dim must be divisible by the H tile"
    assert th % 128 == 0 or th == H, "H tile must be lane-aligned (mult of 128)"

    nh = H // th
    w1t = w1.T.reshape(E, nh, th)
    w2t = w2.T.reshape(E, nh, th)
    w12t = jnp.concatenate([w1t, w2t], axis=-1).reshape(E, 2 * H)
    return PreparedFFN(w12t=w12t, w3t=w3.T, th=th)


# --------------------------------------------------------------------------- #
# Apply path
# --------------------------------------------------------------------------- #
def _pick_tm(M: int, E: int, H: int, th: int, x_item: int, w_item: int,
             out_item: int, vmem_budget: int, tm_max: int = 512) -> int:
    # Token tile = arithmetic-intensity knob (~tm FLOP per streamed weight
    # byte).  Keep >= 2 token tiles when possible so the "parallel" axis can
    # shard across v7x's two TensorCores.
    if M >= 2 * tm_max:
        tm = tm_max
    else:
        tm = max(8, min(_round_up(M, 8), _round_up(-(-M // 2), 8)))

    resident = (th == H)

    def est(tm_):
        x_b = 2 * tm_ * E * x_item            # double-buffered input tile
        o_b = 2 * tm_ * E * out_item          # double-buffered output tile
        a_b = tm_ * E * 4                     # f32 accumulator
        w_b = (3 * E * H * w_item) if resident else (6 * E * th * w_item)
        return x_b + o_b + a_b + w_b

    while tm > 8 and est(tm) > int(vmem_budget * 0.8):
        tm = max(8, _round_up(tm // 2, 8))
    return tm


@functools.partial(jax.jit, static_argnames=("tm", "th", "mxu_dtype"))
def _ffn_pallas(x, w12t, w3t, *, tm, th, mxu_dtype):
    B, S, E = x.shape
    H = w3t.shape[0]
    M = B * S
    nm = pl.cdiv(M, tm)   # partial trailing token block handled by Pallas
    nh = H // th
    resident = (nh == 1)
    # Resident weights: constant block index across the whole grid -> DMA'd
    # exactly once; single-buffer them to halve their VMEM footprint.
    w_pipe = dict(pipeline_mode=pl.Buffered(1)) if resident else {}

    x2d = x.reshape(M, E)   # contiguous reshape, free

    out2d = pl.pallas_call(
        functools.partial(_ffn_kernel, th=th, mxu_dtype=mxu_dtype),
        out_shape=jax.ShapeDtypeStruct((M, E), x.dtype),
        grid_spec=pltpu.PrefetchScalarGridSpec(
            num_scalar_prefetch=0,
            grid=(nm, nh),                               # reduction (H) axis last
            in_specs=[
                pl.BlockSpec((tm, E), lambda i, h: (i, 0)),
                pl.BlockSpec((E, 2 * th), lambda i, h: (0, h), **w_pipe),
                pl.BlockSpec((th, E), lambda i, h: (h, 0), **w_pipe),
            ],
            out_specs=pl.BlockSpec((tm, E), lambda i, h: (i, 0)),
            scratch_shapes=[pltpu.VMEM((tm, E), jnp.float32)],
        ),
        compiler_params=pltpu.CompilerParams(
            # token axis shards across TensorCores (v7x megacore);
            # H axis carries the accumulator -> must be "arbitrary".
            dimension_semantics=("parallel", "arbitrary"),
            vmem_limit_bytes=_vmem_limit_bytes(),
        ),
    )(x2d, w12t, w3t)
    return out2d.reshape(B, S, E)


def ffn_apply(x, prep: PreparedFFN, *, tm: Optional[int] = None, mxu_dtype=None):
    """x: [B, S, E]; prep: from prepare_ffn_weights()."""
    B, S, E = x.shape
    H = prep.w3t.shape[0]
    assert prep.w12t.shape == (E, 2 * H), "prepared weights do not match emb_dim"
    if tm is None:
        tm = _pick_tm(B * S, E, H, prep.th, x.dtype.itemsize,
                      prep.w12t.dtype.itemsize, x.dtype.itemsize,
                      _vmem_limit_bytes())
    assert tm % 8 == 0, "token tile must be sublane-aligned (mult of 8)"
    return _ffn_pallas(x, prep.w12t, prep.w3t, tm=tm, th=prep.th,
                       mxu_dtype=mxu_dtype)


def feed_forward(x, w1, w2, w3, *, th=None, tm=None):
    """One-shot API (module parity). For repeated calls, prepare once."""
    prep = prepare_ffn_weights(w1, w2, w3, th=th)
    return ffn_apply(x, prep, tm=tm)


def feed_forward_ref(x, w1, w2, w3):
    h1 = jnp.einsum("bse,he->bsh", x, w1)
    h2 = jnp.einsum("bse,he->bsh", x, w2)
    return jnp.einsum("bsh,eh->bse", jax.nn.silu(h1) * h2, w3)


# --------------------------------------------------------------------------- #
# Demo / self-test
# --------------------------------------------------------------------------- #
if __name__ == "__main__":
    # cfg: emb_dim=128, hidden_dim=256, dtype=float32 (small demo shapes)
    B, S, E, H = 2, 96, 128, 256
    dtype = jnp.float32

    key = jax.random.PRNGKey(0)
    kx, k1, k2, k3 = jax.random.split(key, 4)
    x = jax.random.normal(kx, (B, S, E), dtype=dtype)
    # nn.Linear layout: (out_features, in_features).
    w1 = jax.random.normal(k1, (H, E), dtype=dtype) * 0.02
    w2 = jax.random.normal(k2, (H, E), dtype=dtype) * 0.02
    w3 = jax.random.normal(k3, (E, H), dtype=dtype) * 0.02

    ref = feed_forward_ref(x, w1, w2, w3)

    # 1) Auto config: weights fully resident (th=H, single-buffered), token
    #    axis split into >= 2 tiles for the parallel grid axis.
    prep = prepare_ffn_weights(w1, w2, w3)
    out = jax.block_until_ready(ffn_apply(x, prep))
    assert out.shape == (B, S, E)
    assert jnp.allclose(out, ref, atol=1e-4, rtol=1e-4), "auto-config mismatch"

    # 2) Streamed-H accumulator + partial trailing token block (no padding):
    #    M=192, tm=80 -> nm=3 (last tile ragged); th=128 -> nh=2.
    prep_s = prepare_ffn_weights(w1, w2, w3, th=128)
    out_s = jax.block_until_ready(ffn_apply(x, prep_s, tm=80))
    assert jnp.allclose(out_s, ref, atol=1e-4, rtol=1e-4), "streamed-H mismatch"

    # 3) bf16 operands: bf16 MXU path for both dots, f32 accumulation.
    prep_b = prepare_ffn_weights(w1, w2, w3, dtype=jnp.bfloat16)
    out_b = jax.block_until_ready(ffn_apply(x.astype(jnp.bfloat16), prep_b))
    assert out_b.shape == (B, S, E)
    err = jnp.max(jnp.abs(out_b.astype(jnp.float32) - ref))
    assert bool(jnp.isfinite(err)) and float(err) < 5e-2, "bf16 path mismatch"

    print("KERNEL_OK")
</pallas_src>

<mosaic_0001>
module attributes {stable_mosaic.version = 11 : i64} {
  func.func @_ffn_kernel(%arg0: i32, %arg1: i32, %arg2: memref<96x128xf32, #tpu.memory_space<vmem>>, %arg3: memref<128x512xf32, #tpu.memory_space<vmem>>, %arg4: memref<256x128xf32, #tpu.memory_space<vmem>>, %arg5: memref<96x128xf32, #tpu.memory_space<vmem>>, %arg6: memref<96x128xf32, #tpu.memory_space<vmem>>) attributes {dimension_semantics = [#tpu.dimension_semantics<parallel>, #tpu.dimension_semantics<arbitrary>], iteration_bounds = array<i64: 2, 1>, scalar_prefetch = 0 : i64, scratch_operands = 1 : i64, tpu.core_type = #tpu.core_type<tc>, window_params = [{transform_indices = @transform_0, window_bounds = array<i64: 96, 128>}, {pipeline_mode = #tpu.pipeline_mode<synchronous>, transform_indices = @transform_1, window_bounds = array<i64: 128, 512>}, {pipeline_mode = #tpu.pipeline_mode<synchronous>, transform_indices = @transform_2, window_bounds = array<i64: 256, 128>}, {transform_indices = @transform_3, window_bounds = array<i64: 96, 128>}]} {
    %c0_i32 = arith.constant 0 : i32
    %0 = arith.cmpi eq, %arg1, %c0_i32 : i32
    %1 = arith.extui %0 : i1 to i32
    %c0_i32_0 = arith.constant 0 : i32
    %2 = arith.cmpi ne, %1, %c0_i32_0 : i32
    scf.if %2 {
      %cst_14 = arith.constant 0.000000e+00 : f32
      %23 = vector.broadcast %cst_14 : f32 to vector<96x128xf32>
      %c0_15 = arith.constant 0 : index
      %c0_16 = arith.constant 0 : index
      %24 = vector.load %arg6[%c0_15, %c0_16] : memref<96x128xf32, #tpu.memory_space<vmem>>, vector<96x128xf32>
      tpu.vector_store %arg6[%c0_15, %c0_16], %23 {strides = array<i32>} : memref<96x128xf32, #tpu.memory_space<vmem>>, vector<96x128xf32>,
    } else {
    }
    %c0 = arith.constant 0 : index
    %c0_1 = arith.constant 0 : index
    %3 = vector.load %arg2[%c0, %c0_1] : memref<96x128xf32, #tpu.memory_space<vmem>>, vector<96x128xf32>
    %c0_2 = arith.constant 0 : index
    %c0_3 = arith.constant 0 : index
    %4 = vector.load %arg3[%c0_2, %c0_3] : memref<128x512xf32, #tpu.memory_space<vmem>>, vector<128x512xf32>
    %cst = arith.constant dense<0.000000e+00> : vector<96x512xf32>
    %5 = tpu.matmul %3, %4, %cst {dimension_numbers = #tpu.dot_dimension_numbers<[1], [0], [0], [1], [0, 0, 1, 1], [], []>} : vector<96x128xf32>, vector<128x512xf32>, vector<96x512xf32> -> vector<96x512xf32>
    %6 = vector.extract_strided_slice %5 {offsets = [0, 0], sizes = [96, 256], strides = [1, 1]} : vector<96x512xf32> to vector<96x256xf32>
    %7 = arith.negf %6 : vector<96x256xf32>
    %8 = math.exp %7 : vector<96x256xf32>
    %cst_4 = arith.constant 1.000000e+00 : f32
    %9 = vector.broadcast %cst_4 : f32 to vector<96x256xf32>
    %10 = arith.addf %9, %8 : vector<96x256xf32>
    %11 = arith.divf %9, %10 : vector<96x256xf32>
    %12 = arith.mulf %6, %11 : vector<96x256xf32>
    %13 = vector.extract_strided_slice %5 {offsets = [0, 256], sizes = [96, 256], strides = [1, 1]} : vector<96x512xf32> to vector<96x256xf32>
    %14 = arith.mulf %12, %13 : vector<96x256xf32>
    %c0_5 = arith.constant 0 : index
    %c0_6 = arith.constant 0 : index
    %15 = vector.load %arg6[%c0_5, %c0_6] : memref<96x128xf32, #tpu.memory_space<vmem>>, vector<96x128xf32>
    %c0_7 = arith.constant 0 : index
    %c0_8 = arith.constant 0 : index
    %16 = vector.load %arg4[%c0_7, %c0_8] : memref<256x128xf32, #tpu.memory_space<vmem>>, vector<256x128xf32>
    %cst_9 = arith.constant dense<0.000000e+00> : vector<96x128xf32>
    %17 = tpu.matmul %14, %16, %cst_9 {dimension_numbers = #tpu.dot_dimension_numbers<[1], [0], [0], [1], [0, 0, 1, 1], [], []>} : vector<96x256xf32>, vector<256x128xf32>, vector<96x128xf32> -> vector<96x128xf32>
    %18 = arith.addf %15, %17 : vector<96x128xf32>
    %c0_10 = arith.constant 0 : index
    %c0_11 = arith.constant 0 : index
    %19 = vector.load %arg6[%c0_10, %c0_11] : memref<96x128xf32, #tpu.memory_space<vmem>>, vector<96x128xf32>
    tpu.vector_store %arg6[%c0_10, %c0_11], %18 {strides = array<i32>} : memref<96x128xf32, #tpu.memory_space<vmem>>, vector<96x128xf32>,
    %c0_i32_12 = arith.constant 0 : i32
    %20 = arith.cmpi eq, %arg1, %c0_i32_12 : i32
    %21 = arith.extui %20 : i1 to i32
    %c0_i32_13 = arith.constant 0 : i32
    %22 = arith.cmpi ne, %21, %c0_i32_13 : i32
    scf.if %22 {
      %c0_14 = arith.constant 0 : index
      %c0_15 = arith.constant 0 : index
      %23 = vector.load %arg6[%c0_14, %c0_15] : memref<96x128xf32, #tpu.memory_space<vmem>>, vector<96x128xf32>
      %c0_16 = arith.constant 0 : index
      %c0_17 = arith.constant 0 : index
      %24 = vector.load %arg5[%c0_16, %c0_17] : memref<96x128xf32, #tpu.memory_space<vmem>>, vector<96x128xf32>
      tpu.vector_store %arg5[%c0_16, %c0_17], %23 {strides = array<i32>} : memref<96x128xf32, #tpu.memory_space<vmem>>, vector<96x128xf32>,
    } else {
    }
    return
  }
  func.func @transform_0(%arg0: i32, %arg1: i32) -> (i32, i32) {
    %c0_i32 = arith.constant 0 : i32
    %c0_i32_0 = arith.constant 0 : i32
    return %arg0, %c0_i32 : i32, i32
  }
  func.func @transform_1(%arg0: i32, %arg1: i32) -> (i32, i32) {
    %c0_i32 = arith.constant 0 : i32
    %c0_i32_0 = arith.constant 0 : i32
    return %c0_i32, %arg1 : i32, i32
  }
  func.func @transform_2(%arg0: i32, %arg1: i32) -> (i32, i32) {
    %c0_i32 = arith.constant 0 : i32
    %c0_i32_0 = arith.constant 0 : i32
    return %arg1, %c0_i32 : i32, i32
  }
  func.func @transform_3(%arg0: i32, %arg1: i32) -> (i32, i32) {
    %c0_i32 = arith.constant 0 : i32
    %c0_i32_0 = arith.constant 0 : i32
    return %arg0, %c0_i32 : i32, i32
  }
}

</mosaic_0001>

<bundles_post_ra>
// kernel: _ffn_pallas.1
= control target key start
LH: loop header
LB: loop body
LE: loop exit
PB: predicated region body
PF: predicated region fallthrough
CT: control target
= control target key end

     0   :  { %8 = vsyncpa [#allocation4], 0  ;;  %s2230_s0 = inlined_call_operand.hbm [shape: f32[192,128], index: 0, kind: input, shape index: {}]   ;;  %s2231_s1 = inlined_call_operand.hbm [shape: f32[128,512], index: 1, kind: input, shape index: {}]   ;;  %s2232_s2 = inlined_call_operand.hbm [shape: f32[256,128], index: 2, kind: input, shape index: {}]   ;;  %s2233_s3 = inlined_call_operand.hbm [shape: f32[192,128], index: 3, kind: output, shape index: {}]  }
   0x1   :  { %10 = vsyncpa [#allocation4 + $0x1], 0 }
   0x2   :  { %11 = vsyncpa [#allocation7], 0 }
   0x3   :  { %12 = vsyncpa [#allocation5], 0 }
   0x4   :  { %14 = vsyncpa [#allocation5 + $0x1], 0  ;;  %s1758_s12 = smov 0   ;;  %s1760_s13 = smov 0  }
   0x5   :  { %s1762_s14 = smov 0   ;;  %s1764_s15 = smov 0  }
   0x6   :  { %s1766_s16 = smov 0   ;;  %s1768_s17 = smov 0  }
   0x7 LB: > { %s1146_s18 = sadd.s32 4294967295, %s1725_s17   ;;  %s1147_s19 = sadd.s32 4294967294, %s1725_s17   ;;  %s1725_s17 = sphi %s1768_s17, %s20_s17   ;;  %s1721_s16 = sphi %s1766_s16, %s2255_s16   ;;  %s1717_s15 = sphi %s1764_s15, %s2254_s15   ;;  %s1713_s14 = sphi %s1762_s14, %s2253_s14   ;;  %s1709_s13 = sphi %s1760_s13, %s2252_s13   ;;  %s1705_s12 = sphi %s1758_s12, %s2251_s12  }
   0x8   : > { %p52_p0 = scmp.ne.s32.totalorder %s1709_s13, %s1705_s12  ;;  %p1792_p1 = scmp.eq.s32.totalorder %s1146_s18, 0 }
   0x9   : > { %p1796_p2 = scmp.eq.s32.totalorder %s1146_s18, 1  ;;  %p134_p3 = scmp.eq.s32.totalorder %s1147_s19, 1 }
   0xa   : > { %s2238_s20 = scalar_select %p1792_p1, 1, 0 }
   0xb   : > { %p1802_p4 = por %p1792_p1, %p52_p0  ;;  %p1148_p5 = scmp.ge.s32.totalorder %s1725_s17, 1 }
   0xc   : > { %p1807_p6 = por %p134_p3, %p52_p0  ;;  %p141_p7 = scmp.lt.s32.totalorder %s1725_s17, 3 }
   0xd   : > { %s2240_s22 = scalar_select %p1802_p4, 1, 0 }
   0xe   : > { %s2241_s23 = scalar_select %p1807_p6, 1, 0 }
   0xf   : > { %p1812_p8 = pnand %p1148_p5, %p141_p7  ;;  %s1727_s25 = smov [#allocation6]  }
  0x10   : > { %s156_s26 = sshll.u32 %s1727_s25, 4  ;;  %s1728_s28 = smov [#allocation8]   ;;  %s1816_s26 = int_to_ptr.vmem [resolvable:$true] %s156_s26 }
  0x11   : > { %p1379_p9 = pneg %p1812_p8  ;;  %s172_s29 = sshll.u32 %s1728_s28, 4  ;;  %s1827_s29 = int_to_ptr.vmem [resolvable:$true] %s172_s29 }
  0x12   : > { %s1553_s5 = scalar_lea.hbm %s2231_s1, 8192 }
  0x13   : > { %p1823_p11 = pnand %p1379_p9, %p1792_p1  ;;  %p1554_p12 = scmp.ne.s32.totalorder %s2231_s1, %s1553_s5 }
  0x14   : > { %p1560_p5 = scmp.lt.u32.totalorder %s1553_s5, %s2231_s1 }
  0x15   : > { %p1555_p13 = pneg %p1823_p11 }
  0x17   : > { %p1556_p0 = pnand %p1555_p13, %p1554_p12 }
  0x19   : > { %p1557_p3 = pneg %p1556_p0 }
  0x1b   : > { %p1562_p7 = pnand %p1560_p5, %p1557_p3 }
  0x1d   : > { %1565 = shalt.err (!%p1562_p7)
}
  0x1e   : > { %s1566_s10 = scalar_lea.vmem %s1816_s26, 8192  ;;  %p1574_p1 = scmp.lt.s32.totalorder %s1816_s26, %s1816_s26 }
  0x1f   : > { %p1567_p9 = scmp.ne.s32.totalorder %s1816_s26, %s1566_s10  ;;  %p1575_p12 = scmp.lt.s32.totalorder %s1566_s10, %s1566_s10 }
  0x21   : > { %p1569_p10 = pnand %p1567_p9, %p1555_p13  ;;  %p1576_p0 = por %p1575_p12, %p1574_p1 }
  0x23   : > { %p1570_p6 = pneg %p1569_p10 }
  0x25   : > { %p1577_p4 = pnand %p1576_p0, %p1570_p6 }
  0x27   : > { %1580 = shalt.err (!%p1577_p4)
}
  0x28   : > { %s1729_s11 = smov 512   ;;  %s1730_s18 = smov 32  }
  0x29   : > { %1382 = dma.hbm_to_vmem [thread:$0]  (!%p1823_p11), %s2231_s1, 8192, %s1816_s26, [#allocation7], %s1729_s11, %s1729_s11, %s1730_s18  }
  0x2a   : > { %s1581_s4 = scalar_lea.hbm %s2232_s2, 4096 }
  0x2b   : > { %p1582_p1 = scmp.ne.s32.totalorder %s2232_s2, %s1581_s4  ;;  %p1588_p10 = scmp.lt.u32.totalorder %s1581_s4, %s2232_s2 }
  0x2d   : > { %p1584_p4 = pnand %p1582_p1, %p1555_p13 }
  0x2f   : > { %p1585_p6 = pneg %p1584_p4 }
  0x31   : > { %p1590_p3 = pnand %p1588_p10, %p1585_p6 }
  0x33   : > { %1593 = shalt.err (!%p1590_p3)
}
  0x34   : > { %s1594_s26 = scalar_lea.vmem %s1827_s29, 4096  ;;  %p1602_p12 = scmp.lt.s32.totalorder %s1827_s29, %s1827_s29 }
  0x35   : > { %p1595_p5 = scmp.ne.s32.totalorder %s1827_s29, %s1594_s26  ;;  %p1603_p0 = scmp.lt.s32.totalorder %s1594_s26, %s1594_s26 }
  0x37   : > { %p1597_p7 = pnand %p1595_p5, %p1555_p13  ;;  %p1604_p1 = por %p1603_p0, %p1602_p12 }
  0x39   : > { %p1598_p9 = pneg %p1597_p7 }
  0x3b   : > { %p1605_p4 = pnand %p1604_p1, %p1598_p9 }
  0x3d   : > { %1608 = shalt.err (!%p1605_p4)
}
  0x3e   : > { %s1731_s9 = smov 128   ;;  %s1732_s10 = smov 8  }
  0x3f   : > { %1385 = dma.hbm_to_vmem [thread:$0]  (!%p1823_p11), %s2232_s2, 4096, %s1827_s29, [#allocation7], %s1731_s9, %s1731_s9, %s1732_s10  }
  0x40   : > { %s32_s19 = sadd.s32 1, %s1721_s16  ;;  %s39_s25 = sadd.s32 1, %s1713_s14 }
  0x41   : > { %p34_p13 = scmp.ge.s32.totalorder %s32_s19, 2  ;;  %p46_p6 = scmp.ne.s32.totalorder %s1713_s14, %s1709_s13 }
  0x42   : > { %p47_p10 = scmp.eq.s32.totalorder %s1725_s17, 0  ;;  %p1396_p3 = scmp.lt.s32.totalorder %s1725_s17, 2 }
  0x43   : > { %s2257_s19 = smov (%p34_p13, %s32_s19), 0  ;;  %p1894_p7 = por %p1796_p2, %p46_p6 }
  0x44   : > { %p48_p5 = por %p47_p10, %p46_p6  ;;  %s36_s28 = ssub.s32 %s1721_s16, %s2257_s19 }
  0x45   : > { %s2244_s27 = scalar_select %p1894_p7, 1, 0 }
  0x46   : > { %s186_s30 = sand.u32 1, %s1713_s14   ;;  %p37_p9 = scmp.eq.s32.totalorder %s36_s28, 0 }
  0x47   : > { %s1365_s29 = smul.u32 96, %s186_s30  ;;  %p1901_p11 = pnand %p1396_p3, %p48_p5 }
  0x48   : > { %s1906_s5 = scalar_select %p37_p9, %s1713_s14, %s39_s25  }
  0x49   : > { %s1183_s6 = smul.u32 1536, %s1721_s16  ;;  %s190_s7 = scalar_lea.vmem [#allocation3], %s1365_s29 }
  0x4a   : > { %s197_s8 = sshll.u32 %s190_s7, 4  ;;  %s1916_s18 = scalar_lea.sflag [#allocation4], %s186_s30  ;;  %s1914_s8 = int_to_ptr.vmem [resolvable:$true] %s197_s8 }
  0x4b   : > { %s1912_s11 = scalar_lea.hbm %s2230_s0, %s1183_s6  ;;  %p1611_p12 = pneg %p1901_p11 }
  0x4c   : > { %s1609_s28 = scalar_lea.hbm %s1912_s11, 1536  ;;  %s1614_s6 = scalar_lea.hbm %s2230_s0, 3072 }
  0x4d   : > { %p1610_p2 = scmp.ne.s32.totalorder %s1912_s11, %s1609_s28  ;;  %p1615_p4 = scmp.lt.u32.totalorder %s1912_s11, %s2230_s0 }
  0x4e   : > { %p1616_p13 = scmp.lt.u32.totalorder %s1614_s6, %s1609_s28  ;;  %p1618_p10 = scmp.lt.u32.totalorder %s1609_s28, %s1912_s11 }
  0x4f   : > { %p1612_p0 = pnand %p1611_p12, %p1610_p2 }
  0x50   : > { %p1617_p6 = por %p1616_p13, %p1615_p4 }
  0x51   : > { %p1613_p1 = pneg %p1612_p0 }
  0x52   : > { %p1619_p3 = por %p1618_p10, %p1617_p6 }
  0x54   : > { %p1620_p5 = pnand %p1619_p3, %p1613_p1 }
  0x56   : > { %1623 = shalt.err (!%p1620_p5)
}
  0x57   : > { %s1624_s30 = scalar_lea.vmem %s1914_s8, 1536  ;;  %s1733_s26 = smov [#allocation3]  }
  0x58   : > { %p1625_p9 = scmp.ne.s32.totalorder %s1914_s8, %s1624_s30  ;;  %s1629_s25 = sshll.u32 %s1733_s26, 4  ;;  %s1630_s25 = int_to_ptr.vmem [resolvable:$false] %s1629_s25 }
  0x59   : > { %s1631_s29 = scalar_lea.vmem %s1630_s25, 3072  ;;  %p1632_p7 = scmp.lt.s32.totalorder %s1914_s8, %s1630_s25 }
  0x5a   : > { %p1627_p2 = pnand %p1625_p9, %p1611_p12  ;;  %p1633_p4 = scmp.lt.s32.totalorder %s1631_s29, %s1624_s30 }
  0x5c   : > { %p1628_p0 = pneg %p1627_p2  ;;  %p1634_p13 = por %p1633_p4, %p1632_p7 }
  0x5e   : > { %p1635_p6 = pnand %p1634_p13, %p1628_p0 }
  0x60   : > { %1638 = shalt.err (!%p1635_p6)
}
  0x61   : > { %1389 = dma.hbm_to_vmem [thread:$0]  (!%p1901_p11), %s1912_s11, 1536, %s1914_s8, %s1916_s18, %s1731_s9, %s1731_s9, %s1732_s10  }
  0x62   : > { %209 = sbr.rel (%p1812_p8) target bundleno = 666 (0x29a), region = 32  ;;  %s1950_s28 = sand.u32 (!%p1812_p8), 1, %s1709_s13  }
  0x63   : > { %s1366_s6 = smul.u32 (!%p1812_p8), 96, %s1950_s28  ;;  %s212_s7 = scalar_lea.sflag (!%p1812_p8), [#allocation4], %s1950_s28 }
  0x64   : > { %p2246_p7 = scmp.ne.s32.totalorder (!%p1812_p8), %s2240_s22, 0 }
  0x65   : > { %s1956_s4 = scalar_lea.vmem (!%p1812_p8), [#allocation3], %s1366_s6 }
  0x69   : > { %1692 = dma.done.wait (%p2246_p7), %s212_s7, 1536  }
  0x6a   : > { %1694 = vsyncadd (%p2246_p7), %s212_s7, 4294965760  ;;  %p2247_p11 = scmp.ne.s32.totalorder %s2238_s20, 0 }
  0x6c   : > { %1696 = dma.done.wait (%p2247_p11), [#allocation7], 12288  }
  0x6d   : > { %1698 = vsyncadd (%p2247_p11), [#allocation7], 4294955008  ;;  %v1734_v0 = vmov 0.0   ;;  %v279_v1 = vld [vmem:[#allocation6 + $0x8] sm:$0xff]  ;;  %v278_v3 = vld [vmem:[#allocation6] sm:$0xff]  ;;  %s2160_s20 = scalar_lea.vmem [#allocation9], %s1366_s6 }
  0x6e   : > { %406 = vmatprep.mubr.f32.mxu0 %v1734_v0  ;;  %543 = vmatprep.mubr.f32.mxu1 %v1734_v0  ;;  %v283_v2 = vld [vmem:[#allocation6 + $0x28] sm:$0xff]  ;;  %v282_v5 = vld [vmem:[#allocation6 + $0x20] sm:$0xff]  ;;  %v281_v24 = vld [vmem:[#allocation6 + $0x18] sm:$0xff]  ;;  %s1184_s22 = smul.u32 1536, %s1717_s15  ;;  %s1042_s24 = sshll.u32 %s2160_s20, 4  ;;  %s2180_s24 = int_to_ptr.vmem [resolvable:$true] %s1042_s24 }
  0x6f   : > { %v1253_v4 = vpack.c.bf16 %v283_v2, %v279_v1  ;;  %v287_v6 = vld [vmem:[#allocation6 + $0x48] sm:$0xff]  ;;  %v1255_v8 = vpack.c.bf16 %v282_v5, %v278_v3  ;;  %v286_v10 = vld [vmem:[#allocation6 + $0x40] sm:$0xff]  ;;  %v285_v25 = vld [vmem:[#allocation6 + $0x38] sm:$0xff]  ;;  %s1029_s11 = scalar_lea.sflag [#allocation5], %s1950_s28  ;;  %s1639_s18 = scalar_lea.vmem %s2180_s24, 1536 }
  0x70   : > { %v291_v7 = vld [vmem:[#allocation6 + $0x68] sm:$0xff]  ;;  %v290_v11 = vld [vmem:[#allocation6 + $0x60] sm:$0xff]  ;;  %v1285_v28 = vpack.c.bf16 %v285_v25, %v281_v24  ;;  %v280_v29 = vld [vmem:[#allocation6 + $0x10] sm:$0xff]  ;;  %s2178_s8 = scalar_lea.hbm %s2233_s3, %s1184_s22  ;;  %p1640_p8 = scmp.ne.s32.totalorder %s2180_s24, %s1639_s18 }
  0x71   : > { %v1257_v9 = vpack.c.bf16 %v291_v7, %v287_v6  ;;  %v295_v12 = vld [vmem:[#allocation6 + $0x88] sm:$0xff]  ;;  %1254 = vmatprep.subr.bf16.mxu0 %v1253_v4  ;;  %v1259_v14 = vpack.c.bf16 %v290_v11, %v286_v10  ;;  %v294_v16 = vld [vmem:[#allocation6 + $0x80] sm:$0xff]  ;;  %v284_v31 = vld [vmem:[#allocation6 + $0x30] sm:$0xff]  ;;  %p2248_p12 = scmp.ne.s32.totalorder %s2244_s27, 0  ;;  %s1735_s15 = smov [#allocation9]  }
  0x72   : > { %v299_v13 = vld [vmem:[#allocation6 + $0xa8] sm:$0xff]  ;;  %1256 = vmatpush1.bf16.msra.mxu0 %v1255_v8  ;;  %v298_v17 = vld [vmem:[#allocation6 + $0xa0] sm:$0xff]  ;;  %1286 = vmatprep.subr.bf16.mxu1 %v1285_v28  ;;  %v1287_v34 = vpack.c.bf16 %v284_v31, %v280_v29  ;;  %v289_v35 = vld [vmem:[#allocation6 + $0x58] sm:$0xff]  ;;  %s1643_s21 = sshll.u32 %s1735_s15, 4  ;;  %s1644_s21 = int_to_ptr.vmem [resolvable:$false] %s1643_s21 }
  0x73   : > { %1258 = vmatprep.subr.bf16.mxu0 %v1257_v9  ;;  %v1261_v15 = vpack.c.bf16 %v299_v13, %v295_v12  ;;  %v303_v18 = vld [vmem:[#allocation6 + $0xc8] sm:$0xff]  ;;  %v1263_v20 = vpack.c.bf16 %v298_v17, %v294_v16  ;;  %v302_v21 = vld [vmem:[#allocation6 + $0xc0] sm:$0xff]  ;;  %v293_v36 = vld [vmem:[#allocation6 + $0x78] sm:$0xff]  ;;  %p1641_p1 = pnand %p1640_p8, %p2248_p12  ;;  %s1645_s30 = scalar_lea.vmem %s1644_s21, 3072 }
  0x74   : > { %v307_v19 = vld [vmem:[#allocation6 + $0xe8] sm:$0xff]  ;;  %v306_v23 = vld [vmem:[#allocation6 + $0xe0] sm:$0xff]  ;;  %v1289_v38 = vpack.c.bf16 %v293_v36, %v289_v35  ;;  %v288_v39 = vld [vmem:[#allocation6 + $0x50] sm:$0xff]  ;;  %1288 = vmatpush1.bf16.msra.mxu1 %v1287_v34  ;;  %p1646_p3 = scmp.lt.s32.totalorder %s2180_s24, %s1644_s21  ;;  %p1647_p5 = scmp.lt.s32.totalorder %s1645_s30, %s1639_s18 }
  0x75   : > { %v1265_v22 = vpack.c.bf16 %v307_v19, %v303_v18  ;;  %v311_v26 = vld [vmem:[#allocation6 + $0x108] sm:$0xff]  ;;  %v310_v30 = vld [vmem:[#allocation6 + $0x100] sm:$0xff]  ;;  %v1267_v32 = vpack.c.bf16 %v306_v23, %v302_v21  ;;  %v292_v40 = vld [vmem:[#allocation6 + $0x70] sm:$0xff]  ;;  %p1642_p10 = pneg %p1641_p1 }
  0x76   : > { %1260 = vmatpush1.bf16.msra.mxu0 %v1259_v14  ;;  %v315_v27 = vld [vmem:[#allocation6 + $0x128] sm:$0xff]  ;;  %v314_v33 = vld [vmem:[#allocation6 + $0x120] sm:$0xff]  ;;  %v297_v41 = vld [vmem:[#allocation6 + $0x98] sm:$0xff]  ;;  %v1291_v44 = vpack.c.bf16 %v292_v40, %v288_v39  ;;  %1290 = vmatprep.subr.bf16.mxu1 %v1289_v38  ;;  %p1648_p9 = por %p1647_p5, %p1646_p3 }
  0x77   : > { %1262 = vmatprep.subr.bf16.mxu0 %v1261_v15  ;;  %v1269_v37 = vpack.c.bf16 %v315_v27, %v311_v26  ;;  %v319_v42 = vld [vmem:[#allocation6 + $0x148] sm:$0xff]  ;;  %v301_v45 = vld [vmem:[#allocation6 + $0xb8] sm:$0xff]  ;;  %v296_v47 = vld [vmem:[#allocation6 + $0x90] sm:$0xff]  ;;  %v1271_v49 = vpack.c.bf16 %v314_v33, %v310_v30 }
  0x78   : > { %v323_v43 = vld [vmem:[#allocation6 + $0x168] sm:$0xff]  ;;  %v1293_v46 = vpack.c.bf16 %v301_v45, %v297_v41  ;;  %v300_v48 = vld [vmem:[#allocation6 + $0xb0] sm:$0xff]  ;;  %v305_v50 = vld [vmem:[#allocation6 + $0xd8] sm:$0xff]  ;;  %1292 = vmatpush1.bf16.msra.mxu1 %v1291_v44  ;;  %p1649_p2 = pnand %p1648_p9, %p1642_p10 }
  0x79   : > { %v309_v51 = vld [vmem:[#allocation6 + $0xf8] sm:$0xff]  ;;  %v1273_v52 = vpack.c.bf16 %v323_v43, %v319_v42  ;;  %v318_v53 = vld [vmem:[#allocation6 + $0x140] sm:$0xff]  ;;  %v327_v55 = vld [vmem:[#allocation6 + $0x188] sm:$0xff]  ;;  %v1295_v57 = vpack.c.bf16 %v300_v48, %v296_v47 }
  0x7a   : > { %1264 = vmatpush1.bf16.msra.mxu0 %v1263_v20  ;;  %v322_v54 = vld [vmem:[#allocation6 + $0x160] sm:$0xff]  ;;  %v331_v56 = vld [vmem:[#allocation6 + $0x1a8] sm:$0xff]  ;;  %1294 = vmatprep.subr.bf16.mxu1 %v1293_v46  ;;  %v1297_v58 = vpack.c.bf16 %v309_v51, %v305_v50  ;;  %v304_v59 = vld [vmem:[#allocation6 + $0xd0] sm:$0xff] }
  0x7b   : > { %1266 = vmatprep.subr.bf16.mxu0 %v1265_v22  ;;  %v308_v60 = vld [vmem:[#allocation6 + $0xf0] sm:$0xff]  ;;  %v1275_v61 = vpack.c.bf16 %v322_v54, %v318_v53  ;;  %v313_v62 = vld [vmem:[#allocation6 + $0x118] sm:$0xff]  ;;  %v1277_v1 = vpack.c.bf16 %v331_v56, %v327_v55  ;;  %v326_v2 = vld [vmem:[#allocation6 + $0x180] sm:$0xff] }
  0x7c   : > { %v317_v63 = vld [vmem:[#allocation6 + $0x138] sm:$0xff]  ;;  %v330_v3 = vld [vmem:[#allocation6 + $0x1a0] sm:$0xff]  ;;  %v335_v4 = vld [vmem:[#allocation6 + $0x1c8] sm:$0xff]  ;;  %1296 = vmatpush1.bf16.msra.mxu1 %v1295_v57  ;;  %v1299_v6 = vpack.c.bf16 %v308_v60, %v304_v59 }
  0x7d   : > { %v339_v5 = vld [vmem:[#allocation6 + $0x1e8] sm:$0xff]  ;;  %1298 = vmatprep.subr.bf16.mxu1 %v1297_v58  ;;  %v1301_v7 = vpack.c.bf16 %v317_v63, %v313_v62  ;;  %v312_v8 = vld [vmem:[#allocation6 + $0x110] sm:$0xff]  ;;  %v1279_v10 = vpack.c.bf16 %v330_v3, %v326_v2  ;;  %v321_v11 = vld [vmem:[#allocation6 + $0x158] sm:$0xff] }
  0x7e   : > { %1268 = vmatpush1.bf16.msra.mxu0 %v1267_v32  ;;  %v316_v9 = vld [vmem:[#allocation6 + $0x130] sm:$0xff]  ;;  %v325_v12 = vld [vmem:[#allocation6 + $0x178] sm:$0xff]  ;;  %v1281_v13 = vpack.c.bf16 %v339_v5, %v335_v4  ;;  %v334_v14 = vld [vmem:[#allocation6 + $0x1c0] sm:$0xff] }
  0x7f   : > { %1270 = vmatprep.subr.bf16.mxu0 %v1269_v37  ;;  %v338_v15 = vld [vmem:[#allocation6 + $0x1e0] sm:$0xff]  ;;  %v1303_v16 = vpack.c.bf16 %v316_v9, %v312_v8  ;;  %v1305_v17 = vpack.c.bf16 %v325_v12, %v321_v11  ;;  %v320_v18 = vld [vmem:[#allocation6 + $0x150] sm:$0xff]  ;;  %v329_v21 = vld [vmem:[#allocation6 + $0x198] sm:$0xff] }
  0x80   : > { %1300 = vmatpush1.bf16.msra.mxu1 %v1299_v6  ;;  %v324_v19 = vld [vmem:[#allocation6 + $0x170] sm:$0xff]  ;;  %v1283_v20 = vpack.c.bf16 %v338_v15, %v334_v14  ;;  %v333_v22 = vld [vmem:[#allocation6 + $0x1b8] sm:$0xff]  ;;  %v266_v27 = vld [vmem:[%s1956_s4] sm:$0xff] }
  0x81   : > { %1302 = vmatprep.subr.bf16.mxu1 %v1301_v7  ;;  %v1307_v23 = vpack.c.bf16 %v324_v19, %v320_v18  ;;  %v1309_v24 = vpack.c.bf16 %v333_v22, %v329_v21  ;;  %v328_v25 = vld [vmem:[#allocation6 + $0x190] sm:$0xff]  ;;  %v337_v28 = vld [vmem:[#allocation6 + $0x1d8] sm:$0xff]  ;;  %v267_v34 = vld [vmem:[%s1956_s4 + $0x8] sm:$0xff] }
  0x82   : > { %1272 = vmatpush1.bf16.msra.mxu0 %v1271_v49  ;;  %v332_v26 = vld [vmem:[#allocation6 + $0x1b0] sm:$0xff]  ;;  %v341_v29 = vld [vmem:[#allocation6 + $0x1f8] sm:$0xff]  ;;  %v270_v38 = vld [vmem:[%s1956_s4 + $0x20] sm:$0xff] }
  0x83   : > { %1274 = vmatprep.subr.bf16.mxu0 %v1273_v52  ;;  %v1311_v30 = vpack.c.bf16 %v332_v26, %v328_v25  ;;  %v1313_v31 = vpack.c.bf16 %v341_v29, %v337_v28  ;;  %v336_v32 = vld [vmem:[#allocation6 + $0x1d0] sm:$0xff]  ;;  %v269_v37 = vld [vmem:[%s1956_s4 + $0x18] sm:$0xff]  ;;  %v271_v39 = vld [vmem:[%s1956_s4 + $0x28] sm:$0xff] }
  0x84   : > { %1304 = vmatpush1.bf16.msra.mxu1 %v1303_v16  ;;  %v340_v33 = vld [vmem:[#allocation6 + $0x1f0] sm:$0xff]  ;;  %v273_v41 = vld [vmem:[%s1956_s4 + $0x38] sm:$0xff]  ;;  %v274_v42 = vld [vmem:[%s1956_s4 + $0x40] sm:$0xff] }
  0x85   : > { %1306 = vmatprep.subr.bf16.mxu1 %v1305_v17  ;;  %v1315_v35 = vpack.c.bf16 %v340_v33, %v336_v32  ;;  %v268_v36 = vld [vmem:[%s1956_s4 + $0x10] sm:$0xff]  ;;  %v275_v43 = vld [vmem:[%s1956_s4 + $0x48] sm:$0xff]  ;;  %v277_v45 = vld [vmem:[%s1956_s4 + $0x58] sm:$0xff] }
  0x86   : > { %1276 = vmatpush1.bf16.msra.mxu0 %v1275_v61  ;;  %v272_v40 = vld [vmem:[%s1956_s4 + $0x30] sm:$0xff]  ;;  %v836_v46 = vld [vmem:[#allocation8 + $0x80] sm:$0xff]  ;;  %v837_v47 = vld [vmem:[#allocation8 + $0x88] sm:$0xff] }
  0x87   : > { %1278 = vmatprep.subr.bf16.mxu0 %v1277_v1  ;;  %v276_v44 = vld [vmem:[%s1956_s4 + $0x50] sm:$0xff]  ;;  %v1317_v48 = vpack.c.bf16 %v837_v47, %v836_v46  ;;  %v820_v49 = vld [vmem:[#allocation8] sm:$0xff]  ;;  %v821_v50 = vld [vmem:[#allocation8 + $0x8] sm:$0xff] }
  0x88   : > { %1308 = vmatpush1.bf16.msra.mxu1 %v1307_v23  ;;  %v1319_v51 = vpack.c.bf16 %v821_v50, %v820_v49  ;;  %v838_v52 = vld [vmem:[#allocation8 + $0x90] sm:$0xff]  ;;  %v839_v53 = vld [vmem:[#allocation8 + $0x98] sm:$0xff]  ;;  %v841_v58 = vld [vmem:[#allocation8 + $0xa8] sm:$0xff] }
  0x89   : > { %1310 = vmatprep.subr.bf16.mxu1 %v1309_v24  ;;  %v1321_v54 = vpack.c.bf16 %v839_v53, %v838_v52  ;;  %v822_v55 = vld [vmem:[#allocation8 + $0x10] sm:$0xff]  ;;  %v823_v56 = vld [vmem:[#allocation8 + $0x18] sm:$0xff]  ;;  %v824_v60 = vld [vmem:[#allocation8 + $0x20] sm:$0xff] }
  0x8a   : > { %1280 = vmatpush1.bf16.msra.mxu0 %v1279_v10  ;;  %v1323_v57 = vpack.c.bf16 %v823_v56, %v822_v55  ;;  %v825_v61 = vld [vmem:[#allocation8 + $0x28] sm:$0xff]  ;;  %v842_v63 = vld [vmem:[#allocation8 + $0xb0] sm:$0xff]  ;;  %v843_v1 = vld [vmem:[#allocation8 + $0xb8] sm:$0xff] }
  0x8b   : > { %1282 = vmatprep.subr.bf16.mxu0 %v1281_v13  ;;  %v1327_v62 = vpack.c.bf16 %v825_v61, %v824_v60  ;;  %v1329_v2 = vpack.c.bf16 %v843_v1, %v842_v63  ;;  %v826_v3 = vld [vmem:[#allocation8 + $0x30] sm:$0xff]  ;;  %v827_v4 = vld [vmem:[#allocation8 + $0x38] sm:$0xff]  ;;  %v844_v6 = vld [vmem:[#allocation8 + $0xc0] sm:$0xff] }
  0x8c   : > { %1312 = vmatpush1.bf16.msra.mxu1 %v1311_v30  ;;  %v1331_v5 = vpack.c.bf16 %v827_v4, %v826_v3  ;;  %v845_v7 = vld [vmem:[#allocation8 + $0xc8] sm:$0xff]  ;;  %v828_v9 = vld [vmem:[#allocation8 + $0x40] sm:$0xff]  ;;  %v846_v12 = vld [vmem:[#allocation8 + $0xd0] sm:$0xff] }
  0x8d   : > { %1314 = vmatprep.subr.bf16.mxu1 %v1313_v31  ;;  %v1333_v8 = vpack.c.bf16 %v845_v7, %v844_v6  ;;  %v829_v10 = vld [vmem:[#allocation8 + $0x48] sm:$0xff]  ;;  %v847_v13 = vld [vmem:[#allocation8 + $0xd8] sm:$0xff]  ;;  %v830_v15 = vld [vmem:[#allocation8 + $0x50] sm:$0xff] }
  0x8e   : > { %1284 = vmatpush1.bf16.msra.mxu0 %v1283_v20  ;;  %v1335_v11 = vpack.c.bf16 %v829_v10, %v828_v9  ;;  %v1337_v14 = vpack.c.bf16 %v847_v13, %v846_v12  ;;  %v831_v16 = vld [vmem:[#allocation8 + $0x58] sm:$0xff]  ;;  %v848_v18 = vld [vmem:[#allocation8 + $0xe0] sm:$0xff]  ;;  %v849_v19 = vld [vmem:[#allocation8 + $0xe8] sm:$0xff] }
  0x8f   : > { %1318 = vmatprep.subr.bf16.mxu0 %v1317_v48  ;;  %v1339_v17 = vpack.c.bf16 %v831_v16, %v830_v15  ;;  %v1341_v20 = vpack.c.bf16 %v849_v19, %v848_v18  ;;  %v832_v21 = vld [vmem:[#allocation8 + $0x60] sm:$0xff]  ;;  %v833_v22 = vld [vmem:[#allocation8 + $0x68] sm:$0xff]  ;;  %v850_v24 = vld [vmem:[#allocation8 + $0xf0] sm:$0xff] }
  0x90   : > { %1316 = vmatpush1.bf16.msra.mxu1 %v1315_v35  ;;  %v1343_v23 = vpack.c.bf16 %v833_v22, %v832_v21  ;;  %v851_v25 = vld [vmem:[#allocation8 + $0xf8] sm:$0xff] }
  0x91   : > { %407 = vmatmul.mubr.f32.vlgmr.msra.gmra.mrb[0].mxu0 %v266_v27  ;;  %1349 = vmatprep.subr.bf16.mxu1 %v1317_v48  ;;  %v1345_v26 = vpack.c.bf16 %v851_v25, %v850_v24  ;;  %v835_v28 = vld [vmem:[#allocation8 + $0x78] sm:$0xff] }
  0x92   : > { %412 = vmatprep.mubr.f32.mxu0 %v1734_v0  ;;  %1320 = vmatpush3.bf16.msra.mxu0 %v1319_v51 }
  0x93   : > { %544 = vmatmul.mubr.f32.vlgmr.msra.gmra.mrb[0].mxu1 %v266_v27  ;;  %1322 = vmatprep.subr.bf16.mxu0 %v1321_v54  ;;  %v834_v27 = vld [vmem:[#allocation8 + $0x70] sm:$0xff] }
  0x94   : > { %549 = vmatprep.mubr.f32.mxu1 %v1734_v0  ;;  %1357 = vmatpush3.bf16.msra.mxu1 %v1319_v51  ;;  %v1347_v29 = vpack.c.bf16 %v835_v28, %v834_v27 }
  0x95   : > { %413 = vmatmul.mubr.f32.gmra.mrb[2].mxu0 %v267_v34  ;;  %1350 = vmatprep.subr.bf16.mxu1 %v1321_v54 }
  0x96   : > { %418 = vmatprep.mubr.f32.mxu0 %v1734_v0  ;;  %1324 = vmatpush3.bf16.msra.mxu0 %v1323_v57 }
  0x97   : > { %550 = vmatmul.mubr.f32.gmra.mrb[2].mxu1 %v267_v34 }
  0x98   : > { %555 = vmatprep.mubr.f32.mxu1 %v1734_v0  ;;  %1358 = vmatpush3.bf16.msra.mxu1 %v1323_v57 }
  0x99   : > { %419 = vmatmul.mubr.f32.gmra.mrb[4].mxu0 %v268_v36 }
  0x9a   : > { %424 = vmatprep.mubr.f32.mxu0 %v1734_v0 }
  0x9b   : > { %556 = vmatmul.mubr.f32.gmra.mrb[4].mxu1 %v268_v36 }
  0x9c   : > { %561 = vmatprep.mubr.f32.mxu1 %v1734_v0 }
  0x9d   : > { %425 = vmatmul.mubr.f32.gmra.mrb[6].mxu0 %v269_v37 }
  0x9e   : > { %430 = vmatprep.mubr.f32.mxu0 %v1734_v0 }
  0x9f   : > { %562 = vmatmul.mubr.f32.gmra.mrb[6].mxu1 %v269_v37 }
  0xa0   : > { %567 = vmatprep.mubr.f32.mxu1 %v1734_v0 }
  0xa1   : > { %431 = vmatmul.mubr.f32.gmra.mrb[8].mxu0 %v270_v38 }
  0xa2   : > { %436 = vmatprep.mubr.f32.mxu0 %v1734_v0 }
  0xa3   : > { %568 = vmatmul.mubr.f32.gmra.mrb[8].mxu1 %v270_v38 }
  0xa4   : > { %573 = vmatprep.mubr.f32.mxu1 %v1734_v0 }
  0xa5   : > { %437 = vmatmul.mubr.f32.gmra.mrb[10].mxu0 %v271_v39 }
  0xa6   : > { %442 = vmatprep.mubr.f32.mxu0 %v1734_v0 }
  0xa7   : > { %574 = vmatmul.mubr.f32.gmra.mrb[10].mxu1 %v271_v39 }
  0xa8   : > { %579 = vmatprep.mubr.f32.mxu1 %v1734_v0 }
  0xa9   : > { %443 = vmatmul.mubr.f32.gmra.mrb[12].mxu0 %v272_v40 }
  0xaa   : > { %448 = vmatprep.mubr.f32.mxu0 %v1734_v0 }
  0xab   : > { %580 = vmatmul.mubr.f32.gmra.mrb[12].mxu1 %v272_v40 }
  0xac   : > { %585 = vmatprep.mubr.f32.mxu1 %v1734_v0 }
  0xad   : > { %449 = vmatmul.mubr.f32.gmra.mrb[14].mxu0 %v273_v41 }
  0xae   : > { %454 = vmatprep.mubr.f32.mxu0 %v1734_v0 }
  0xaf   : > { %586 = vmatmul.mubr.f32.gmra.mrb[14].mxu1 %v273_v41 }
  0xb0   : > { %591 = vmatprep.mubr.f32.mxu1 %v1734_v0 }
  0xb1   : > { %455 = vmatmul.mubr.f32.gmra.mrb[16].mxu0 %v274_v42 }
  0xb2   : > { %460 = vmatprep.mubr.f32.mxu0 %v1734_v0 }
  0xb3   : > { %592 = vmatmul.mubr.f32.gmra.mrb[16].mxu1 %v274_v42 }
  0xb4   : > { %597 = vmatprep.mubr.f32.mxu1 %v1734_v0 }
  0xb5   : > { %461 = vmatmul.mubr.f32.gmra.mrb[18].mxu0 %v275_v43 }
  0xb6   : > { %466 = vmatprep.mubr.f32.mxu0 %v1734_v0 }
  0xb7   : > { %598 = vmatmul.mubr.f32.gmra.mrb[18].mxu1 %v275_v43 }
  0xb8   : > { %603 = vmatprep.mubr.f32.mxu1 %v1734_v0 }
  0xb9   : > { %467 = vmatmul.mubr.f32.gmra.mrb[20].mxu0 %v276_v44 }
  0xba   : > { %472 = vmatprep.mubr.f32.mxu0 %v1734_v0 }
  0xbb   : > { %604 = vmatmul.mubr.f32.gmra.mrb[20].mxu1 %v276_v44 }
  0xbc   : > { %609 = vmatprep.mubr.f32.mxu1 %v1734_v0  ;;  %v840_v0 = vld [vmem:[#allocation8 + $0xa0] sm:$0xff] }
  0xbd   : > { %473 = vmatmul.mubr.f32.gmra.mrb[22].mxu0 %v277_v45  ;;  %v1325_v59 = vpack.c.bf16 %v841_v58, %v840_v0 }
  0xbf   : > { %610 = vmatmul.mubr.f32.gmra.mrb[22].mxu1 %v277_v45  ;;  %1326 = vmatprep.subr.bf16.mxu0 %v1325_v59 }
  0xc0   : > { %1351 = vmatprep.subr.bf16.mxu1 %v1325_v59  ;;  %1328 = vmatpush3.bf16.msra.mxu0 %v1327_v62 }
  0xc1   : > { %1359 = vmatpush3.bf16.msra.mxu1 %v1327_v62  ;;  %1330 = vmatprep.subr.bf16.mxu0 %v1329_v2 }
  0xc2   : > { %1352 = vmatprep.subr.bf16.mxu1 %v1329_v2 }
  0xc4   : > { %1332 = vmatpush3.bf16.msra.mxu0 %v1331_v5 }
  0xc5   : > { %1360 = vmatpush3.bf16.msra.mxu1 %v1331_v5  ;;  %1334 = vmatprep.subr.bf16.mxu0 %v1333_v8 }
  0xc6   : > { %1353 = vmatprep.subr.bf16.mxu1 %v1333_v8 }
  0xc8   : > { %1336 = vmatpush3.bf16.msra.mxu0 %v1335_v11 }
  0xc9   : > { %1361 = vmatpush3.bf16.msra.mxu1 %v1335_v11  ;;  %1338 = vmatprep.subr.bf16.mxu0 %v1337_v14 }
  0xca   : > { %1354 = vmatprep.subr.bf16.mxu1 %v1337_v14 }
  0xcc   : > { %1340 = vmatpush3.bf16.msra.mxu0 %v1339_v17 }
  0xcd   : > { %1362 = vmatpush3.bf16.msra.mxu1 %v1339_v17  ;;  %1342 = vmatprep.subr.bf16.mxu0 %v1341_v20 }
  0xce   : > { %1355 = vmatprep.subr.bf16.mxu1 %v1341_v20 }
  0xd0   : > { %1344 = vmatpush3.bf16.msra.mxu0 %v1343_v23 }
  0xd1   : > { %1363 = vmatpush3.bf16.msra.mxu1 %v1343_v23  ;;  %1346 = vmatprep.subr.bf16.mxu0 %v1345_v26 }
  0xd2   : > { %1356 = vmatprep.subr.bf16.mxu1 %v1345_v26 }
  0xd4   : > { %1348 = vmatpush3.bf16.msra.mxu0 %v1347_v29 }
  0xd5   : > { %1364 = vmatpush3.bf16.msra.mxu1 %v1347_v29 }
 0x164   : > { %v2002_v30 = vpop.f32.mrb[0].mxu0 }
 0x165   : > { %v1156_v31 = vmul.f32 -1.442695, %v2002_v30  ;;  %v2005_v32 = vpop.f32.mrb[1].mxu0 }
 0x166   : > { %v1157_v33 = vmul.f32 -1.442695, %v2005_v32  ;;  %v2020_v42 = vpop.f32.mrb[0].mxu1 }
 0x167   : > { %1457 = vpow2.f32 %v1156_v31  ;;  %v2022_v43 = vpop.f32.mrb[1].mxu1 }
 0x168   : > { %1459 = vpow2.f32 %v1157_v33  ;;  %v2008_v34 = vpop.f32.mrb[2].mxu0 }
 0x169   : > { %v1158_v35 = vmul.f32 -1.442695, %v2008_v34  ;;  %v2011_v36 = vpop.f32.mrb[3].mxu0 }
 0x16a   : > { %v1159_v37 = vmul.f32 -1.442695, %v2011_v36  ;;  %v2030_v51 = vpop.f32.mrb[2].mxu1 }
 0x16b   : > { %1461 = vpow2.f32 %v1158_v35  ;;  %v2032_v53 = vpop.f32.mrb[3].mxu1 }
 0x16c   : > { %1463 = vpow2.f32 %v1159_v37  ;;  %v2014_v38 = vpop.f32.mrb[4].mxu0 }
 0x16d   : > { %v1160_v39 = vmul.f32 -1.442695, %v2014_v38  ;;  %v2017_v40 = vpop.f32.mrb[5].mxu0 }
 0x16e   : > { %v1161_v41 = vmul.f32 -1.442695, %v2017_v40  ;;  %v2040_v60 = vpop.f32.mrb[4].mxu1 }
 0x16f   : > { %1465 = vpow2.f32 %v1160_v39  ;;  %v2042_v62 = vpop.f32.mrb[5].mxu1 }
 0x170   : > { %1467 = vpow2.f32 %v1161_v41  ;;  %v2024_v44 = vpop.f32.mrb[6].mxu0 }
 0x171   : > { %v1458_v45 = vpop.eup %1457  ;;  %v1162_v46 = vmul.f32 -1.442695, %v2024_v44  ;;  %v2027_v47 = vpop.f32.mrb[7].mxu0 }
 0x172   : > { %v1460_v48 = vpop.eup %1459  ;;  %v688_v49 = vadd.f32 1.0, %v1458_v45  ;;  %v1163_v50 = vmul.f32 -1.442695, %v2027_v47  ;;  %v2050_v7 = vpop.f32.mrb[6].mxu1 }
 0x173   : > { %v689_v52 = vadd.f32 1.0, %v1460_v48  ;;  %1469 = vpow2.f32 %v1162_v46  ;;  %v2052_v9 = vpop.f32.mrb[7].mxu1 }
 0x174   : > { %1471 = vrcp.f32 %v688_v49  ;;  %v2034_v54 = vpop.f32.mrb[8].mxu0 }
 0x175   : > { %v1462_v55 = vpop.eup %1461  ;;  %1473 = vrcp.f32 %v689_v52  ;;  %v1164_v56 = vmul.f32 -1.442695, %v2034_v54  ;;  %v2037_v57 = vpop.f32.mrb[9].mxu0 }
 0x176   : > { %v1464_v0 = vpop.eup %1463  ;;  %v690_v58 = vadd.f32 1.0, %v1462_v55  ;;  %1475 = vpow2.f32 %v1163_v50  ;;  %v1165_v59 = vmul.f32 -1.442695, %v2037_v57  ;;  %v2060_v17 = vpop.f32.mrb[8].mxu1 }
 0x177   : > { %v691_v61 = vadd.f32 1.0, %v1464_v0  ;;  %1477 = vpow2.f32 %v1164_v56  ;;  %v2063_v20 = vpop.f32.mrb[9].mxu1 }
 0x178   : > { %1479 = vrcp.f32 %v690_v58  ;;  %v2044_v63 = vpop.f32.mrb[10].mxu0 }
 0x179   : > { %v1466_v1 = vpop.eup %1465  ;;  %1481 = vrcp.f32 %v691_v61  ;;  %v1166_v2 = vmul.f32 -1.442695, %v2044_v63  ;;  %v2047_v3 = vpop.f32.mrb[11].mxu0 }
 0x17a   : > { %v1468_v4 = vpop.eup %1467  ;;  %v692_v5 = vadd.f32 1.0, %v1466_v1  ;;  %1483 = vpow2.f32 %v1165_v59  ;;  %v1167_v6 = vmul.f32 -1.442695, %v2047_v3  ;;  %v2074_v35 = vpop.f32.mrb[10].mxu1 }
 0x17b   : > { %v693_v8 = vadd.f32 1.0, %v1468_v4  ;;  %1485 = vpow2.f32 %v1166_v2  ;;  %v2077_v39 = vpop.f32.mrb[11].mxu1 }
 0x17c   : > { %1487 = vrcp.f32 %v692_v5  ;;  %v2054_v10 = vpop.f32.mrb[12].mxu0 }
 0x17d   : > { %v1470_v11 = vpop.eup %1469  ;;  %1489 = vrcp.f32 %v693_v8  ;;  %v1168_v12 = vmul.f32 -1.442695, %v2054_v10  ;;  %v2057_v13 = vpop.f32.mrb[13].mxu0 }
 0x17e   : > { %v1472_v14 = vpop.eup %1471  ;;  %v694_v15 = vadd.f32 1.0, %v1470_v11  ;;  %1491 = vpow2.f32 %v1167_v6  ;;  %v1169_v16 = vmul.f32 -1.442695, %v2057_v13  ;;  %v2088_v56 = vpop.f32.mrb[12].mxu1 }
 0x17f   : > { %v1474_v18 = vpop.eup %1473  ;;  %v760_v19 = vmul.f32 %v1472_v14, %v2002_v30  ;;  %1493 = vpow2.f32 %v1168_v12  ;;  %v2091_v59 = vpop.f32.mrb[13].mxu1 }
 0x180   : > { %v1476_v21 = vpop.eup %1475  ;;  %v761_v22 = vmul.f32 %v1474_v18, %v2005_v32  ;;  %1495 = vrcp.f32 %v694_v15  ;;  %v2066_v23 = vpop.f32.mrb[14].mxu0 }
 0x181   : > { %v1478_v24 = vpop.eup %1477  ;;  %v695_v25 = vadd.f32 1.0, %v1476_v21  ;;  %1497 = vpow2.f32 %v1169_v16  ;;  %v784_v26 = vmul.f32 %v760_v19, %v2020_v42  ;;  %v1170_v27 = vmul.f32 -1.442695, %v2066_v23  ;;  %v2070_v28 = vpop.f32.mrb[15].mxu0 }
 0x182   : > { %v1480_v29 = vpop.eup %1479  ;;  %v696_v30 = vadd.f32 1.0, %v1478_v24  ;;  %v785_v31 = vmul.f32 %v761_v22, %v2022_v43  ;;  %v1171_v33 = vmul.f32 -1.442695, %v2070_v28 }
 0x183   : > { %v1482_v32 = vpop.eup %1481  ;;  %v762_v37 = vmul.f32 %v1480_v29, %v2008_v34  ;;  %1499 = vrcp.f32 %v695_v25 }
 0x184   : > { %v1484_v41 = vpop.eup %1483  ;;  %v763_v42 = vmul.f32 %v1482_v32, %v2011_v36  ;;  %1501 = vrcp.f32 %v696_v30  ;;  %v2080_v45 = vpop.f32.mrb[16].mxu0  ;;  %916 = vmatprep.mubr.f32.mxu0 %v785_v31 }
 0x185   : > { %v1486_v46 = vpop.eup %1485  ;;  %v697_v48 = vadd.f32 1.0, %v1484_v41  ;;  %1503 = vpow2.f32 %v1170_v27  ;;  %v786_v43 = vmul.f32 %v762_v37, %v2030_v51  ;;  %v1172_v49 = vmul.f32 -1.442695, %v2080_v45  ;;  %v2084_v50 = vpop.f32.mrb[17].mxu0  ;;  %917 = vmatmul.mubr.f32.vlgmr.msra.gmra.mrb[24].mxu0 %v784_v26 }
 0x186   : > { %v1488_v34 = vpop.eup %1487  ;;  %v698_v52 = vadd.f32 1.0, %v1486_v46  ;;  %1505 = vpow2.f32 %v1171_v33  ;;  %v787_v55 = vmul.f32 %v763_v42, %v2032_v53  ;;  %v1173_v36 = vmul.f32 -1.442695, %v2084_v50 }
 0x187   : > { %v1490_v0 = vpop.eup %1489  ;;  %v764_v58 = vmul.f32 %v1488_v34, %v2014_v38  ;;  %1507 = vrcp.f32 %v697_v48 }
 0x188   : > { %v1492_v51 = vpop.eup %1491  ;;  %v765_v61 = vmul.f32 %v1490_v0, %v2017_v40  ;;  %1509 = vrcp.f32 %v698_v52  ;;  %v2094_v1 = vpop.f32.mrb[18].mxu0  ;;  %921 = vmatprep.mubr.f32.mxu0 %v787_v55 }
 0x189   : > { %v1494_v2 = vpop.eup %1493  ;;  %v699_v4 = vadd.f32 1.0, %v1492_v51  ;;  %1511 = vpow2.f32 %v1172_v49  ;;  %v788_v53 = vmul.f32 %v764_v58, %v2040_v60  ;;  %v1174_v5 = vmul.f32 -1.442695, %v2094_v1  ;;  %v2098_v6 = vpop.f32.mrb[19].mxu0  ;;  %922 = vmatmul.mubr.f32.gmra.mrb[26].mxu0 %v786_v43 }
 0x18a   : > { %v1496_v38 = vpop.eup %1495  ;;  %v700_v8 = vadd.f32 1.0, %v1494_v2  ;;  %1513 = vpow2.f32 %v1173_v36  ;;  %v789_v11 = vmul.f32 %v765_v61, %v2042_v62  ;;  %v2101_v40 = vpop.f32.mrb[14].mxu1  ;;  %v1175_v15 = vmul.f32 -1.442695, %v2098_v6 }
 0x18b   : > { %v1498_v12 = vpop.eup %1497  ;;  %v766_v14 = vmul.f32 %v1496_v38, %v2024_v44  ;;  %1515 = vrcp.f32 %v699_v4  ;;  %v2105_v16 = vpop.f32.mrb[15].mxu1 }
 0x18c   : > { %1517 = vrcp.f32 %v700_v8  ;;  %v701_v60 = vadd.f32 1.0, %v1498_v12  ;;  %v2107_v18 = vpop.f32.mrb[20].mxu0  ;;  %926 = vmatprep.mubr.f32.mxu0 %v789_v11  ;;  %v2115_v26 = vpop.f32.mrb[16].mxu1 }
 0x18d   : > { %v1500_v19 = vpop.eup %1499  ;;  %1519 = vpow2.f32 %v1174_v5  ;;  %v790_v21 = vmul.f32 %v766_v14, %v2050_v7  ;;  %v1176_v62 = vmul.f32 -1.442695, %v2107_v18  ;;  %v2111_v22 = vpop.f32.mrb[21].mxu0  ;;  %927 = vmatmul.mubr.f32.gmra.mrb[28].mxu0 %v788_v53 }
 0x18e   : > { %v1502_v44 = vpop.eup %1501  ;;  %v767_v24 = vmul.f32 %v1500_v19, %v2027_v47  ;;  %1521 = vrcp.f32 %v701_v60  ;;  %v1177_v25 = vmul.f32 -1.442695, %v2111_v22  ;;  %v2118_v30 = vpop.f32.mrb[17].mxu1 }
 0x18f   : > { %v1504_v27 = vpop.eup %1503  ;;  %v768_v29 = vmul.f32 %v1502_v44, %v2034_v54  ;;  %1523 = vpow2.f32 %v1175_v15  ;;  %v2129_v49 = vpop.f32.mrb[18].mxu1 }
 0x190   : > { %v1506_v7 = vpop.eup %1505  ;;  %v702_v31 = vadd.f32 1.0, %v1504_v27  ;;  %1525 = vpow2.f32 %v1176_v62  ;;  %v791_v33 = vmul.f32 %v767_v24, %v2052_v9  ;;  %v2121_v32 = vpop.f32.mrb[22].mxu0 }
 0x191   : > { %v1508_v37 = vpop.eup %1507  ;;  %v703_v47 = vadd.f32 1.0, %v1506_v7  ;;  %1527 = vpow2.f32 %v1177_v25  ;;  %v792_v41 = vmul.f32 %v768_v29, %v2060_v17  ;;  %v1178_v42 = vmul.f32 -1.442695, %v2121_v32  ;;  %v2125_v46 = vpop.f32.mrb[23].mxu0 }
 0x192   : > { %v1510_v54 = vpop.eup %1509  ;;  %v769_v48 = vmul.f32 %v1508_v37, %v2037_v57  ;;  %1529 = vrcp.f32 %v702_v31  ;;  %931 = vmatprep.mubr.f32.mxu0 %v791_v33  ;;  %v1179_v43 = vmul.f32 -1.442695, %v2125_v46  ;;  %v2132_v52 = vpop.f32.mrb[19].mxu1 }
 0x193   : > { %v1512_v9 = vpop.eup %1511  ;;  %v770_v34 = vmul.f32 %v1510_v54, %v2044_v63  ;;  %1531 = vrcp.f32 %v703_v47  ;;  %932 = vmatmul.mubr.f32.gmra.mrb[30].mxu0 %v790_v21  ;;  %v605_v63 = vpop.f32.mrb[20].mxu1 }
 0x194   : > { %v1514_v17 = vpop.eup %1513  ;;  %v704_v55 = vadd.f32 1.0, %v1512_v9  ;;  %1533 = vpow2.f32 %v1178_v42  ;;  %v793_v36 = vmul.f32 %v769_v48, %v2063_v20  ;;  %v607_v53 = vpop.f32.mrb[21].mxu1 }
 0x195   : > { %v1516_v0 = vpop.eup %1515  ;;  %v705_v57 = vadd.f32 1.0, %v1514_v17  ;;  %1535 = vpow2.f32 %v1179_v43  ;;  %v794_v58 = vmul.f32 %v770_v34, %v2074_v35  ;;  %v611_v14 = vpop.f32.mrb[22].mxu1 }
 0x196   : > { %v1518_v51 = vpop.eup %1517  ;;  %v771_v61 = vmul.f32 %v1516_v0, %v2047_v3  ;;  %1537 = vrcp.f32 %v704_v55  ;;  %936 = vmatprep.mubr.f32.mxu0 %v793_v36  ;;  %v613_v19 = vpop.f32.mrb[23].mxu1 }
 0x197   : > { %v1520_v2 = vpop.eup %1519  ;;  %v772_v4 = vmul.f32 %v1518_v51, %v2054_v10  ;;  %1539 = vrcp.f32 %v705_v57  ;;  %937 = vmatmul.mubr.f32.gmra.mrb[32].mxu0 %v792_v41 }
 0x198   : > { %v1522_v5 = vpop.eup %1521  ;;  %v706_v38 = vadd.f32 1.0, %v1520_v2  ;;  %v795_v20 = vmul.f32 %v771_v61, %v2077_v39 }
 0x199   : > { %v1524_v8 = vpop.eup %1523  ;;  %v773_v11 = vmul.f32 %v1522_v5, %v2057_v13  ;;  %v796_v35 = vmul.f32 %v772_v4, %v2088_v56 }
 0x19a   : > { %v1526_v12 = vpop.eup %1525  ;;  %1541 = vrcp.f32 %v706_v38  ;;  %v707_v3 = vadd.f32 1.0, %v1524_v8  ;;  %941 = vmatprep.mubr.f32.mxu0 %v795_v20 }
 0x19b   : > { %v1528_v15 = vpop.eup %1527  ;;  %v708_v60 = vadd.f32 1.0, %v1526_v12  ;;  %v797_v10 = vmul.f32 %v773_v11, %v2091_v59  ;;  %942 = vmatmul.mubr.f32.gmra.mrb[34].mxu0 %v794_v58 }
 0x19c   : > { %v1530_v21 = vpop.eup %1529  ;;  %1543 = vrcp.f32 %v707_v3  ;;  %v709_v62 = vadd.f32 1.0, %v1528_v15 }
 0x19d   : > { %v1532_v39 = vpop.eup %1531  ;;  %v774_v44 = vmul.f32 %v1530_v21, %v2066_v23  ;;  %1545 = vrcp.f32 %v708_v60  ;;  %946 = vmatprep.mubr.f32.mxu1 %v797_v10 }
 0x19e   : > { %v1534_v13 = vpop.eup %1533  ;;  %v775_v56 = vmul.f32 %v1532_v39, %v2070_v28  ;;  %1547 = vrcp.f32 %v709_v62  ;;  %947 = vmatmul.mubr.f32.vlgmr.msra.gmra.mrb[24].mxu1 %v796_v35 }
 0x19f   : > { %v1536_v24 = vpop.eup %1535  ;;  %v710_v25 = vadd.f32 1.0, %v1534_v13  ;;  %v798_v27 = vmul.f32 %v774_v44, %v2101_v40 }
 0x1a0   : > { %v1538_v59 = vpop.eup %1537  ;;  %v711_v29 = vadd.f32 1.0, %v1536_v24  ;;  %v799_v7 = vmul.f32 %v775_v56, %v2105_v16 }
 0x1a1   : > { %v1540_v31 = vpop.eup %1539  ;;  %v776_v33 = vmul.f32 %v1538_v59, %v2080_v45  ;;  %1549 = vrcp.f32 %v710_v25 }
 0x1a2   : > { %v777_v23 = vmul.f32 %v1540_v31, %v2084_v50  ;;  %1551 = vrcp.f32 %v711_v29  ;;  %951 = vmatprep.mubr.f32.mxu1 %v799_v7 }
 0x1a3   : > { %v800_v28 = vmul.f32 %v776_v33, %v2115_v26  ;;  %952 = vmatmul.mubr.f32.gmra.mrb[26].mxu1 %v798_v27 }
 0x1a4   : > { %v1542_v37 = vpop.eup %1541  ;;  %v801_v47 = vmul.f32 %v777_v23, %v2118_v30 }
 0x1a5   : > { %v778_v40 = vmul.f32 %v1542_v37, %v2094_v1 }
 0x1a6   : > { %v1544_v41 = vpop.eup %1543  ;;  %956 = vmatprep.mubr.f32.mxu1 %v801_v47 }
 0x1a7   : > { %v1546_v42 = vpop.eup %1545  ;;  %v779_v16 = vmul.f32 %v1544_v41, %v2098_v6  ;;  %v802_v45 = vmul.f32 %v778_v40, %v2129_v49  ;;  %957 = vmatmul.mubr.f32.gmra.mrb[28].mxu1 %v800_v28 }
 0x1a8   : > { %v1548_v54 = vpop.eup %1547  ;;  %v780_v50 = vmul.f32 %v1546_v42, %v2107_v18 }
 0x1a9   : > { %v781_v48 = vmul.f32 %v1548_v54, %v2111_v22  ;;  %v803_v26 = vmul.f32 %v779_v16, %v2132_v52 }
 0x1aa   : > { %v804_v43 = vmul.f32 %v780_v50, %v605_v63 }
 0x1ab   : > { %v1550_v9 = vpop.eup %1549  ;;  %v805_v30 = vmul.f32 %v781_v48, %v607_v53  ;;  %961 = vmatprep.mubr.f32.mxu1 %v803_v26 }
 0x1ac   : > { %v1552_v1 = vpop.eup %1551  ;;  %v782_v34 = vmul.f32 %v1550_v9, %v2121_v32  ;;  %962 = vmatmul.mubr.f32.gmra.mrb[30].mxu1 %v802_v45 }
 0x1ad   : > { %v783_v6 = vmul.f32 %v1552_v1, %v2125_v46  ;;  %966 = vmatprep.mubr.f32.mxu1 %v805_v30 }
 0x1ae   : > { %v806_v49 = vmul.f32 %v782_v34, %v611_v14 }
 0x1af   : > { %v807_v17 = vmul.f32 %v783_v6, %v613_v19 }
 0x1b0   : > { %967 = vmatmul.mubr.f32.gmra.mrb[32].mxu1 %v804_v43 }
 0x1b1   : > { %971 = vmatprep.mubr.f32.mxu1 %v807_v17 }
 0x1b4   : > { %972 = vmatmul.mubr.f32.gmra.mrb[34].mxu1 %v806_v49 }
 0x258   : > { %v1217_v18 = vpop.f32.mrb[24].mxu0 }
 0x259   : > { %v1218_v22 = vpop.f32.mrb[25].mxu0 }
 0x25a   : > { %v1219_v52 = vadd.f32 %v1218_v22, %v1217_v18 }
 0x25c   : > { %1016 = vst [vmem:[%s2160_s20] sm:$0xff] %v1219_v52  ;;  %v1220_v32 = vpop.f32.mrb[26].mxu0 }
 0x25d   : > { %v1221_v46 = vpop.f32.mrb[27].mxu0 }
 0x25e   : > { %v1222_v55 = vadd.f32 %v1221_v46, %v1220_v32 }
 0x260   : > { %1017 = vst [vmem:[%s2160_s20 + $0x8] sm:$0xff] %v1222_v55  ;;  %v1223_v36 = vpop.f32.mrb[28].mxu0 }
 0x261   : > { %v1224_v0 = vpop.f32.mrb[29].mxu0 }
 0x262   : > { %v1225_v57 = vadd.f32 %v1224_v0, %v1223_v36 }
 0x264   : > { %1018 = vst [vmem:[%s2160_s20 + $0x10] sm:$0xff] %v1225_v57 }
 0x266   : > { %v1226_v58 = vpop.f32.mrb[30].mxu0 }
 0x267   : > { %v1227_v51 = vpop.f32.mrb[31].mxu0 }
 0x268   : > { %v1228_v61 = vadd.f32 %v1227_v51, %v1226_v58 }
 0x26a   : > { %1019 = vst [vmem:[%s2160_s20 + $0x18] sm:$0xff] %v1228_v61  ;;  %v1229_v63 = vpop.f32.mrb[32].mxu0 }
 0x26b   : > { %v1230_v2 = vpop.f32.mrb[33].mxu0 }
 0x26c   : > { %v1231_v4 = vadd.f32 %v1230_v2, %v1229_v63 }
 0x26e   : > { %1020 = vst [vmem:[%s2160_s20 + $0x20] sm:$0xff] %v1231_v4  ;;  %v1232_v53 = vpop.f32.mrb[34].mxu0 }
 0x26f   : > { %v1233_v5 = vpop.f32.mrb[35].mxu0 }
 0x270   : > { %v1234_v38 = vadd.f32 %v1233_v5, %v1232_v53 }
 0x271   : > { %v1235_v20 = vpop.f32.mrb[24].mxu1 }
 0x272   : > { %1021 = vst [vmem:[%s2160_s20 + $0x28] sm:$0xff] %v1234_v38  ;;  %v1236_v8 = vpop.f32.mrb[25].mxu1 }
 0x273   : > { %v1237_v11 = vadd.f32 %v1236_v8, %v1235_v20 }
 0x275   : > { %1022 = vst [vmem:[%s2160_s20 + $0x30] sm:$0xff] %v1237_v11 }
 0x276   : > { %v1238_v35 = vpop.f32.mrb[26].mxu1 }
 0x277   : > { %v1239_v12 = vpop.f32.mrb[27].mxu1 }
 0x278   : > { %v1240_v3 = vadd.f32 %v1239_v12, %v1238_v35 }
 0x27a   : > { %1023 = vst [vmem:[%s2160_s20 + $0x38] sm:$0xff] %v1240_v3  ;;  %v1241_v14 = vpop.f32.mrb[28].mxu1 }
 0x27b   : > { %v1242_v15 = vpop.f32.mrb[29].mxu1 }
 0x27c   : > { %v1243_v60 = vadd.f32 %v1242_v15, %v1241_v14 }
 0x27e   : > { %1024 = vst [vmem:[%s2160_s20 + $0x40] sm:$0xff] %v1243_v60 }
 0x27f   : > { %v1244_v10 = vpop.f32.mrb[30].mxu1 }
 0x280   : > { %v1245_v19 = vpop.f32.mrb[31].mxu1 }
 0x281   : > { %v1246_v21 = vadd.f32 %v1245_v19, %v1244_v10 }
 0x283   : > { %1025 = vst [vmem:[%s2160_s20 + $0x48] sm:$0xff] %v1246_v21  ;;  %v1247_v62 = vpop.f32.mrb[32].mxu1 }
 0x284   : > { %v1248_v39 = vpop.f32.mrb[33].mxu1 }
 0x285   : > { %v1249_v44 = vadd.f32 %v1248_v39, %v1247_v62 }
 0x287   : > { %1026 = vst [vmem:[%s2160_s20 + $0x50] sm:$0xff] %v1249_v44  ;;  %v1250_v13 = vpop.f32.mrb[34].mxu1 }
 0x288   : > { %v1251_v56 = vpop.f32.mrb[35].mxu1 }
 0x289   : > { %v1252_v24 = vadd.f32 %v1251_v56, %v1250_v13 }
 0x28b   : > { %1027 = vst [vmem:[%s2160_s20 + $0x58] sm:$0xff] %v1252_v24 }
 0x28c   : > { %1652 = shalt.err (!%p1649_p2)
}
 0x28d   : > { %s1653_s26 = scalar_lea.hbm %s2178_s8, 1536  ;;  %s1657_s6 = scalar_lea.hbm %s2233_s3, 3072 }
 0x28e   : > { %p1654_p0 = scmp.ne.s32.totalorder %s2178_s8, %s1653_s26  ;;  %p1658_p6 = scmp.lt.u32.totalorder %s2178_s8, %s2233_s3 }
 0x28f   : > { %p1659_p7 = scmp.lt.u32.totalorder %s1657_s6, %s1653_s26  ;;  %p1661_p8 = scmp.lt.u32.totalorder %s1653_s26, %s2178_s8 }
 0x290   : > { %p1655_p4 = pnand %p1654_p0, %p2248_p12 }
 0x291   : > { %p1660_p11 = por %p1659_p7, %p1658_p6 }
 0x292   : > { %p1656_p13 = pneg %p1655_p4 }
 0x293   : > { %p1662_p1 = por %p1661_p8, %p1660_p11 }
 0x295   : > { %p1663_p10 = pnand %p1662_p1, %p1656_p13 }
 0x297   : > { %1666 = shalt.err (!%p1663_p10)
}
 0x298   : > { %s1736_s20 = smov 128   ;;  %s1737_s22 = smov 8  }
 0x299   : > { %1377 = dma.vmem_to_hbm [thread:$0]  (%p2248_p12), %s2180_s24, 1536, %s2178_s8, %s1029_s11, %s1736_s20, %s1736_s20, %s1737_s22  }
 0x29a PF: > { %s1057_s9 = sand.u32 1, %s1705_s12   ;;  %p2249_p3 = scmp.ne.s32.totalorder %s2241_s23, 0 }
 0x29b   : > { %p2250_p5 = scmp.ge.s32.totalorder %s1725_s17, 2  ;;  %s1058_s10 = scalar_lea.sflag [#allocation5], %s1057_s9 }
 0x29d   : > { %p1391_p9 = pnand %p2250_p5, %p2249_p3 }
 0x29f   : > { %1700 = dma.done.wait (!%p1391_p9), %s1058_s10, 1536  }
 0x2a0   : > { %1702 = vsyncadd (!%p1391_p9), %s1058_s10, 4294965760  ;;  %s20_s17 = sadd.s32 1, %s1725_s17   ;;  %s2251_s12 = smov %s1709_s13 }
 0x2a1   : > { %p17_p2 = scmp.ge.s32.totalorder %s20_s17, 4   ;;  %s2252_s13 = smov %s1713_s14 }
 0x2a2   : > { %s2253_s14 = smov %s1906_s5  ;;  %s2254_s15 = smov %s1721_s16 }
 0x2a3   : > { %s2255_s16 = smov %s2257_s19  ;;  %19 = sbr.rel (!%p17_p2) target bundleno = 7 (0x7), region = 95 }
 0x2aa   :  { %1063 = vsyncpa [#allocation4], 1 }
 0x2ab   :  { %1065 = vsyncpa [#allocation4 + $0x1], 1 }
 0x2ac   :  { %1066 = vsyncpa [#allocation7], 1 }
 0x2ad   :  { %1067 = vsyncpa [#allocation5], 1 }
 0x2ae   :  { %1069 = vsyncpa [#allocation5 + $0x1], 1 }

</bundles_post_ra>
